<compile_context>
chip_gen: v7x
topology: tpu7x:2x2x1
jax: 0.10.0
libtpu: 0.0.40
codegen_flags: <defaults>
</compile_context>

<pallas_src>
import functools

import jax
import jax.numpy as jnp
from jax.experimental import pallas as pl
from jax.experimental.pallas import tpu as pltpu


def _peak_mask_kernel(x_ref, bias_ref, o_ref, *, W):
    # x_ref / o_ref: (cb, H*W) block — cb channels on sublanes, flattened
    # spatial dims on the lane axis. All rolls are along axis 1, so channels
    # never contaminate each other.
    # bias_ref: (4, H*W) — 0 in the interior, -inf where the rolled neighbor
    # does not exist (first/last column, first/last row). Adding the bias is
    # equivalent to the -inf padding of max_pool2d.
    # roll(x, s)[i] == x[i - s]; shifts HW-1 / HW-W normalize to -1 / -W.
    x = x_ref[...]
    HW = x.shape[-1]

    # Horizontal 3-tap max (left / center / right).
    left = pltpu.roll(x, shift=1, axis=1) + bias_ref[0:1, :]
    right = pltpu.roll(x, shift=HW - 1, axis=1) + bias_ref[1:2, :]
    row_max = jnp.maximum(x, jnp.maximum(left, right))

    # Vertical 3-tap max over the row maxima (up / center / down).
    up = pltpu.roll(row_max, shift=W, axis=1) + bias_ref[2:3, :]
    down = pltpu.roll(row_max, shift=HW - W, axis=1) + bias_ref[3:4, :]
    m = jnp.maximum(row_max, jnp.maximum(up, down))

    # out = x * (x == maxpool(x)); clamp(min=0) is a no-op on a {0,1} mask.
    o_ref[...] = jnp.where(x == m, x, jnp.zeros_like(x))


def _round_up(a, m):
    return ((a + m - 1) // m) * m


def _vmem_capacity_bytes():
    # Physical VMEM per TensorCore; fall back to the smallest (v7x: 64 MiB).
    try:
        return int(pltpu.get_tpu_info().vmem_capacity_bytes)
    except Exception:
        return 64 << 20


def just_reshape_forward(x, *, block_budget_bytes=None):
    """x: (C, H, W) float array -> x * (x == maxpool3x3(x, stride=1, pad=1))."""
    if x.ndim != 3:
        raise ValueError("just_reshape_forward expects a CHW input")
    if not jnp.issubdtype(x.dtype, jnp.floating):
        raise TypeError("just_reshape_forward requires a floating dtype input")
    C, H, W = x.shape
    HW = H * W
    itemsize = jnp.dtype(x.dtype).itemsize

    # --- VMEM sizing --------------------------------------------------------
    # Resident footprint per grid step ~= 2x in (dbl-buf) + 2x out (dbl-buf)
    # + ~6x block-sized roll/select temporaries ~= 10x one block, so budget a
    # block at ~1/12 of the scoped VMEM limit, which we set explicitly to 3/4
    # of physical VMEM (96 MiB on v5e/v6e with 128 MiB, 48 MiB on v7x's 64 MiB).
    vmem_cap = _vmem_capacity_bytes()
    vmem_limit = (vmem_cap * 3) // 4
    if block_budget_bytes is None:
        block_budget_bytes = max(HW * itemsize, vmem_limit // 12)

    # Sublane packing multiple for the second-to-last block dim when cb < C:
    # 8 (f32), 16 (bf16/f16), 32 (int8/fp8).
    sub_mult = max(8, 32 // itemsize)

    cb = max(1, int(block_budget_bytes) // (HW * itemsize))
    if C > sub_mult:
        # Keep >= 2 grid steps so both v7x TensorCores get work under
        # dimension_semantics=("parallel",); harmless extra step on 1-TC chips.
        cb = min(cb, _round_up(pl.cdiv(C, 2), sub_mult))
    if cb >= C:
        cb = C
    else:
        cb = max(sub_mult, (cb // sub_mult) * sub_mult)
        cb = min(cb, C)
    # TODO(synk): if a single channel row (H*W) ever exceeds the VMEM budget,
    # tile the lane axis in chunks of k*W rows with a one-row halo instead of
    # shrinking cb below the sublane multiple.

    # --- Boundary bias, built once (no per-step iota / mod in the kernel) ----
    neg_inf = jnp.asarray(-jnp.inf, dtype=x.dtype)
    zero = jnp.zeros((), dtype=x.dtype)
    idx = jnp.arange(HW, dtype=jnp.int32)
    w_idx = idx % W
    bias = jnp.stack([
        jnp.where(w_idx == 0, neg_inf, zero),          # no left neighbor
        jnp.where(w_idx == W - 1, neg_inf, zero),      # no right neighbor
        jnp.where(idx < W, neg_inf, zero),             # no row above
        jnp.where(idx >= (H - 1) * W, neg_inf, zero),  # no row below
    ])  # (4, HW)

    x2 = x.reshape(C, HW)  # free: row-major (C, H, W) flattens to (C, H*W)

    out = pl.pallas_call(
        functools.partial(_peak_mask_kernel, W=W),
        out_shape=jax.ShapeDtypeStruct((C, HW), x.dtype),
        grid=(pl.cdiv(C, cb),),
        in_specs=[
            pl.BlockSpec((cb, HW), lambda c: (c, 0)),
            # Same block index every step -> bias stays VMEM-resident.
            pl.BlockSpec((4, HW), lambda c: (0, 0)),
        ],
        out_specs=pl.BlockSpec((cb, HW), lambda c: (c, 0)),
        compiler_params=pltpu.CompilerParams(
            dimension_semantics=("parallel",),
            vmem_limit_bytes=int(vmem_limit),
        ),
        cost_estimate=pl.CostEstimate(
            flops=10 * C * HW,
            transcendentals=0,
            bytes_accessed=(2 * C * HW + 4 * HW) * itemsize,
        ),
    )(x2, bias)
    return out.reshape(C, H, W)


def _reference(x):
    # Pure-JAX reference: max_pool2d(k=3, s=1, p=1) with -inf padding (PyTorch
    # semantics), then the equality mask.
    ap = jax.lax.reduce_window(
        x,
        jnp.asarray(-jnp.inf, dtype=x.dtype),
        jax.lax.max,
        window_dimensions=(1, 3, 3),
        window_strides=(1, 1, 1),
        padding=((0, 0), (1, 1), (1, 1)),
    )
    return x * (x == ap).astype(x.dtype)


if __name__ == "__main__":
    key = jax.random.PRNGKey(0)
    k0, k1, k2 = jax.random.split(key, 3)

    # Module's forward implies a 3D CHW input (unsqueeze(0) -> NCHW).
    x_small = jax.random.normal(k0, (4, 16, 16), dtype=jnp.float32)
    out_small = jax.block_until_ready(just_reshape_forward(x_small))
    assert out_small.shape == x_small.shape and out_small.dtype == x_small.dtype
    assert jnp.allclose(out_small, _reference(x_small)), "mismatch (small, single block)"

    # Multi-block f32 path: forced budget -> cb = 8, grid = 2, lane axis = 3072.
    x_multi = jax.random.normal(k1, (16, 24, 128), dtype=jnp.float32)
    out_multi = jax.block_until_ready(
        just_reshape_forward(x_multi, block_budget_bytes=8 * 24 * 128 * 4))
    assert jnp.allclose(out_multi, _reference(x_multi)), "mismatch (multi-block f32)"

    # Multi-block bf16 path: sublane multiple 16 -> cb = 16, grid = 2.
    x_bf16 = jax.random.normal(k2, (32, 16, 128), dtype=jnp.bfloat16)
    out_bf16 = jax.block_until_ready(
        just_reshape_forward(x_bf16, block_budget_bytes=16 * 16 * 128 * 2))
    assert out_bf16.dtype == jnp.bfloat16
    assert jnp.allclose(out_bf16.astype(jnp.float32),
                        _reference(x_bf16).astype(jnp.float32)), "mismatch (bf16)"

    print("KERNEL_OK")
</pallas_src>

<mosaic_0001>
module attributes {stable_mosaic.version = 11 : i64} {
  func.func @_peak_mask_kernel(%arg0: i32, %arg1: memref<4x256xf32, #tpu.memory_space<vmem>>, %arg2: memref<4x256xf32, #tpu.memory_space<vmem>>, %arg3: memref<4x256xf32, #tpu.memory_space<vmem>>) attributes {dimension_semantics = [#tpu.dimension_semantics<parallel>], iteration_bounds = array<i64: 1>, scalar_prefetch = 0 : i64, scratch_operands = 0 : i64, tpu.core_type = #tpu.core_type<tc>, window_params = [{transform_indices = @transform_0, window_bounds = array<i64: 4, 256>}, {pipeline_mode = #tpu.pipeline_mode<synchronous>, transform_indices = @transform_1, window_bounds = array<i64: 4, 256>}, {transform_indices = @transform_2, window_bounds = array<i64: 4, 256>}]} {
    %c0 = arith.constant 0 : index
    %c0_0 = arith.constant 0 : index
    %0 = vector.load %arg1[%c0, %c0_0] : memref<4x256xf32, #tpu.memory_space<vmem>>, vector<4x256xf32>
    %c1_i32 = arith.constant 1 : i32
    %1 = tpu.dynamic_rotate %0 by %c1_i32 dim 1 : vector<4x256xf32>, i32 -> vector<4x256xf32>
    %c0_1 = arith.constant 0 : index
    %c0_2 = arith.constant 0 : index
    %2 = vector.load %arg2[%c0_1, %c0_2] : memref<4x256xf32, #tpu.memory_space<vmem>>, vector<1x256xf32>
    %3 = vector.broadcast %2 : vector<1x256xf32> to vector<4x256xf32>
    %4 = arith.addf %1, %3 : vector<4x256xf32>
    %c255_i32 = arith.constant 255 : i32
    %5 = tpu.dynamic_rotate %0 by %c255_i32 dim 1 : vector<4x256xf32>, i32 -> vector<4x256xf32>
    %c1 = arith.constant 1 : index
    %c0_3 = arith.constant 0 : index
    %6 = vector.load %arg2[%c1, %c0_3] : memref<4x256xf32, #tpu.memory_space<vmem>>, vector<1x256xf32>
    %7 = vector.broadcast %6 : vector<1x256xf32> to vector<4x256xf32>
    %8 = arith.addf %5, %7 : vector<4x256xf32>
    %9 = arith.maximumf %4, %8 : vector<4x256xf32>
    %10 = arith.maximumf %0, %9 : vector<4x256xf32>
    %c16_i32 = arith.constant 16 : i32
    %11 = tpu.dynamic_rotate %10 by %c16_i32 dim 1 : vector<4x256xf32>, i32 -> vector<4x256xf32>
    %c2 = arith.constant 2 : index
    %c0_4 = arith.constant 0 : index
    %12 = vector.load %arg2[%c2, %c0_4] : memref<4x256xf32, #tpu.memory_space<vmem>>, vector<1x256xf32>
    %13 = vector.broadcast %12 : vector<1x256xf32> to vector<4x256xf32>
    %14 = arith.addf %11, %13 : vector<4x256xf32>
    %c240_i32 = arith.constant 240 : i32
    %15 = tpu.dynamic_rotate %10 by %c240_i32 dim 1 : vector<4x256xf32>, i32 -> vector<4x256xf32>
    %c3 = arith.constant 3 : index
    %c0_5 = arith.constant 0 : index
    %16 = vector.load %arg2[%c3, %c0_5] : memref<4x256xf32, #tpu.memory_space<vmem>>, vector<1x256xf32>
    %17 = vector.broadcast %16 : vector<1x256xf32> to vector<4x256xf32>
    %18 = arith.addf %15, %17 : vector<4x256xf32>
    %19 = arith.maximumf %14, %18 : vector<4x256xf32>
    %20 = arith.maximumf %10, %19 : vector<4x256xf32>
    %21 = arith.cmpf oeq, %0, %20 : vector<4x256xf32>
    %cst = arith.constant 0.000000e+00 : f32
    %22 = vector.broadcast %cst : f32 to vector<4x256xf32>
    %23 = arith.select %21, %0, %22 : vector<4x256xi1>, vector<4x256xf32>
    %c0_6 = arith.constant 0 : index
    %c0_7 = arith.constant 0 : index
    %24 = vector.load %arg3[%c0_6, %c0_7] : memref<4x256xf32, #tpu.memory_space<vmem>>, vector<4x256xf32>
    tpu.vector_store %arg3[%c0_6, %c0_7], %23 {strides = array<i32>} : memref<4x256xf32, #tpu.memory_space<vmem>>, vector<4x256xf32>,
    return
  }
  func.func @transform_0(%arg0: i32) -> (i32, i32) {
    %c0_i32 = arith.constant 0 : i32
    %c0_i32_0 = arith.constant 0 : i32
    return %arg0, %c0_i32 : i32, i32
  }
  func.func @transform_1(%arg0: i32) -> (i32, i32) {
    %c0_i32 = arith.constant 0 : i32
    %c0_i32_0 = arith.constant 0 : i32
    %c0_i32_1 = arith.constant 0 : i32
    return %c0_i32, %c0_i32_0 : i32, i32
  }
  func.func @transform_2(%arg0: i32) -> (i32, i32) {
    %c0_i32 = arith.constant 0 : i32
    %c0_i32_0 = arith.constant 0 : i32
    return %arg0, %c0_i32 : i32, i32
  }
}

</mosaic_0001>

<bundles_post_ra>
// kernel: tpu_custom_call.1
= control target key start
LH: loop header
LB: loop body
LE: loop exit
PB: predicated region body
PF: predicated region fallthrough
CT: control target
= control target key end

     0   :  { %7 = vsyncpa [#allocation3], 0  ;;  %s312_s0 = inlined_call_operand.hbm [shape: f32[4,256], index: 0, kind: input, shape index: {}]   ;;  %s313_s1 = inlined_call_operand.hbm [shape: f32[4,256], index: 1, kind: input, shape index: {}]   ;;  %s314_s2 = inlined_call_operand.hbm [shape: f32[4,256], index: 2, kind: output, shape index: {}]  }
   0x1   :  { %8 = vsyncpa [#allocation6], 0 }
   0x2   :  { %9 = vsyncpa [#allocation4], 0  ;;  %s245_s9 = smov [#allocation2]   ;;  %s246_s11 = smov [#allocation5]  }
   0x3   :  { %s16_s10 = sshll.u32 %s245_s9, 4  ;;  %s26_s12 = sshll.u32 %s246_s11, 4  ;;  %s17_s10 = int_to_ptr.vmem [resolvable:$true] %s16_s10  ;;  %s27_s12 = int_to_ptr.vmem [resolvable:$true] %s26_s12 }
   0x4   :  { %s173_s15 = scalar_lea.hbm %s312_s0, 128 }
   0x5   :  { %p174_p0 = scmp.ne.s32.totalorder %s312_s0, %s173_s15  ;;  %p177_p1 = scmp.lt.u32.totalorder %s173_s15, %s312_s0 }
   0x7   :  { %p179_p2 = pnand %p177_p1, %p174_p0 }
   0x9   :  { %182 = shalt.err (!%p179_p2)
}
   0xa   :  { %s183_s20 = scalar_lea.vmem %s17_s10, 128  ;;  %p188_p4 = scmp.lt.s32.totalorder %s17_s10, %s17_s10 }
   0xb   :  { %p184_p3 = scmp.ne.s32.totalorder %s17_s10, %s183_s20  ;;  %p189_p5 = scmp.lt.s32.totalorder %s183_s20, %s183_s20 }
   0xd   :  { %p190_p6 = por %p189_p5, %p188_p4 }
   0xf   :  { %p191_p7 = pnand %p190_p6, %p184_p3 }
  0x11   :  { %194 = shalt.err (!%p191_p7)
}
  0x12   :  { %19 = dma.hbm_to_vmem [thread:$0]  %s312_s0, 128, %s17_s10, [#allocation3]  }
  0x13   :  { %s195_s25 = scalar_lea.hbm %s313_s1, 128 }
  0x14   :  { %p196_p8 = scmp.ne.s32.totalorder %s313_s1, %s195_s25  ;;  %p199_p9 = scmp.lt.u32.totalorder %s195_s25, %s313_s1 }
  0x16   :  { %p201_p10 = pnand %p199_p9, %p196_p8 }
  0x18   :  { %204 = shalt.err (!%p201_p10)
}
  0x19   :  { %s205_s30 = scalar_lea.vmem %s27_s12, 128  ;;  %p210_p12 = scmp.lt.s32.totalorder %s27_s12, %s27_s12 }
  0x1a   :  { %p206_p11 = scmp.ne.s32.totalorder %s27_s12, %s205_s30  ;;  %p211_p13 = scmp.lt.s32.totalorder %s205_s30, %s205_s30 }
  0x1c   :  { %p212_p0 = por %p211_p13, %p210_p12 }
  0x1e   :  { %p213_p1 = pnand %p212_p0, %p206_p11 }
  0x20   :  { %216 = shalt.err (!%p213_p1)
}
  0x21   :  { %29 = dma.hbm_to_vmem [thread:$0]  %s313_s1, 128, %s27_s12, [#allocation6]  }
  0x22   :  { %239 = dma.done.wait [#allocation3], 128  }
  0x23   :  { %240 = vsyncadd [#allocation3], 4294967168 }
  0x24   :  { %241 = dma.done.wait [#allocation6], 128  }
  0x25   :  { %242 = vsyncadd [#allocation6], 4294967168  ;;  %v291_v0 = vld [vmem:[#allocation2] sm:$0xff]  ;;  %s247_s4 = smov 127   ;;  %s248_s5 = smov 1   ;;  %v44_v2 = vlaneseq }
  0x26   :  { %63 = vrot.lane.b32.xlu1 %v291_v0, %s247_s4  ;;  %40 = vrot.lane.b32.xlu0 %v291_v0, %s248_s5  ;;  %v38_v1 = vcombine.high %v291_v0, %v291_v0  ;;  %v71_v7 = vld [vmem:[#allocation5 + $0x1] ss:$4 sm:$0x3]  ;;  %v49_v8 = vld [vmem:[#allocation5] ss:$4 sm:$0x3] }
  0x27   :  { %v52_v3 = vshrl.u32 %v44_v2, 7  ;;  %v45_v4 = vand.u32 127, %v44_v2  ;;  %s249_s1 = smov 16   ;;  %s250_s6 = smov 112  }
  0x28   :  { %v103_v31 = vld [vmem:[#allocation5 + $0x2] ss:$4 sm:$0x3]  ;;  %v125_v32 = vld [vmem:[#allocation5 + $0x3] ss:$4 sm:$0x3] }
  0x29   :  { %v53_v5 = vsub.s32 0, %v52_v3  ;;  %v57_v6 = vsub.s32 1, %v52_v3  ;;  %vm67_vm0 = vcmp.lt.s32.totalorder %v45_v4, 127  ;;  %vm46_vm1 = vcmp.lt.s32.totalorder %v45_v4, 1  ;;  %s251_s7 = smov [#allocation7]  }
  0x2a   :  { %65 = vrot.lane.b32.xlu1 %v38_v1, %s247_s4  ;;  %42 = vrot.lane.b32.xlu0 %v38_v1, %s248_s5  ;;  %vm99_vm2 = vcmp.lt.s32.totalorder %v45_v4, 16  ;;  %vm121_vm3 = vcmp.lt.s32.totalorder %v45_v4, 112  ;;  %s155_s8 = sshll.u32 %s251_s7, 4  ;;  %s156_s8 = int_to_ptr.vmem [resolvable:$true] %s155_s8 }
  0x2b   :  { %v76_v11 = vrot.slane %v71_v7, %v53_v5  ;;  %v80_v12 = vrot.slane %v71_v7, %v57_v6  ;;  %v54_v13 = vrot.slane %v49_v8, %v53_v5  ;;  %v58_v14 = vrot.slane %v49_v8, %v57_v6  ;;  %s217_s9 = scalar_lea.vmem %s156_s8, 128  ;;  %p222_p3 = scmp.lt.s32.totalorder %s156_s8, %s156_s8 }
  0x2c   :  { %v108_v34 = vrot.slane %v103_v31, %v53_v5  ;;  %v112_v35 = vrot.slane %v103_v31, %v57_v6  ;;  %v130_v36 = vrot.slane %v125_v32, %v53_v5  ;;  %v134_v37 = vrot.slane %v125_v32, %v57_v6  ;;  %p218_p2 = scmp.ne.s32.totalorder %s156_s8, %s217_s9  ;;  %p223_p4 = scmp.lt.s32.totalorder %s217_s9, %s217_s9 }
  0x2e   :  { %p224_p5 = por %p223_p4, %p222_p3 }
  0x30   :  { %p225_p6 = pnand %p224_p5, %p218_p2 }
  0x98   :  { %v64_v9 = vpop.permute.xlu1 %63  ;;  %v41_v10 = vpop.permute.xlu0 %40 }
  0x9c   :  { %v66_v15 = vpop.permute.xlu1 %65  ;;  %v43_v16 = vpop.permute.xlu0 %42 }
  0x9d   :  { %v68_v17 = vsel %vm67_vm0, %v64_v9, %v66_v15  ;;  %v69_v18 = vsel %vm67_vm0, %v66_v15, %v64_v9  ;;  %v47_v19 = vsel %vm46_vm1, %v41_v10, %v43_v16  ;;  %v48_v20 = vsel %vm46_vm1, %v43_v16, %v41_v10 }
  0x9e   :  { %v83_v21 = vadd.f32 %v76_v11, %v68_v17  ;;  %v84_v22 = vadd.f32 %v80_v12, %v69_v18  ;;  %v61_v23 = vadd.f32 %v54_v13, %v48_v20  ;;  %v62_v24 = vadd.f32 %v58_v14, %v47_v19 }
  0xa0   :  { %v85_v25 = vmax.f32 %v61_v23, %v83_v21  ;;  %v86_v26 = vmax.f32 %v62_v24, %v84_v22 }
  0xa2   :  { %v89_v27 = vcombine.low %v85_v25, %v86_v26 }
  0xa4   :  { %v91_v28 = vmax.f32 %v291_v0, %v89_v27 }
  0xa6   :  { %95 = vrot.lane.b32.xlu0 %v91_v28, %s249_s1  ;;  %v93_v29 = vcombine.high %v91_v28, %v91_v28 }
  0xa8   :  { %97 = vrot.lane.b32.xlu1 %v93_v29, %s249_s1 }
  0xaa   :  { %117 = vrot.lane.b32.xlu0 %v91_v28, %s250_s6 }
  0xac   :  { %119 = vrot.lane.b32.xlu1 %v93_v29, %s250_s6 }
 0x118   :  { %v96_v30 = vpop.permute.xlu0 %95 }
 0x11a   :  { %v98_v33 = vpop.permute.xlu1 %97 }
 0x11b   :  { %v100_v38 = vsel %vm99_vm2, %v96_v30, %v98_v33  ;;  %v101_v39 = vsel %vm99_vm2, %v98_v33, %v96_v30 }
 0x11c   :  { %v118_v40 = vpop.permute.xlu0 %117  ;;  %v115_v44 = vadd.f32 %v108_v34, %v101_v39  ;;  %v116_v45 = vadd.f32 %v112_v35, %v100_v38 }
 0x11e   :  { %v120_v41 = vpop.permute.xlu1 %119 }
 0x11f   :  { %v122_v42 = vsel %vm121_vm3, %v118_v40, %v120_v41  ;;  %v123_v43 = vsel %vm121_vm3, %v120_v41, %v118_v40 }
 0x120   :  { %v137_v46 = vadd.f32 %v130_v36, %v122_v42  ;;  %v138_v47 = vadd.f32 %v134_v37, %v123_v43 }
 0x122   :  { %v139_v48 = vmax.f32 %v115_v44, %v137_v46  ;;  %v140_v49 = vmax.f32 %v116_v45, %v138_v47 }
 0x124   :  { %v143_v50 = vcombine.low %v139_v48, %v140_v49 }
 0x126   :  { %v145_v51 = vmax.f32 %v91_v28, %v143_v50 }
 0x128   :  { %vm146_vm4 = vcmp.eq.f32.partialorder %v291_v0, %v145_v51 }
 0x129   :  { %v147_v52 = vsel %vm146_vm4, %v291_v0, 0.0 }
 0x12a   :  { %148 = vst [vmem:[#allocation7] sm:$0xff] %v147_v52 }
 0x12b   :  { %228 = shalt.err (!%p225_p6)
}
 0x12c   :  { %s229_s12 = scalar_lea.hbm %s314_s2, 128 }
 0x12d   :  { %p230_p7 = scmp.ne.s32.totalorder %s314_s2, %s229_s12  ;;  %p233_p8 = scmp.lt.u32.totalorder %s229_s12, %s314_s2 }
 0x12f   :  { %p235_p9 = pnand %p233_p8, %p230_p7 }
 0x131   :  { %238 = shalt.err (!%p235_p9)
}
 0x132   :  { %158 = dma.vmem_to_hbm [thread:$0]  %s156_s8, 128, %s314_s2, [#allocation4]  }
 0x133   :  { %243 = dma.done.wait [#allocation4], 128  }
 0x134   :  { %244 = vsyncadd [#allocation4], 4294967168 }
 0x135   :  { %162 = vsyncpa [#allocation3], 1 }
 0x136   :  { %163 = vsyncpa [#allocation6], 1 }
 0x137   :  { %164 = vsyncpa [#allocation4], 1 }

</bundles_post_ra>
